<compile_context>
chip_gen: v7x
topology: tpu7x:2x2x1
jax: 0.10.0
libtpu: 0.0.40
codegen_flags: <defaults>
</compile_context>

<pallas_src>
import functools

import jax
import jax.numpy as jnp
from jax.experimental import pallas as pl
from jax.experimental.pallas import tpu as pltpu

LANE = 128     # lane width (last dim alignment)
SUBLANE = 8    # sublane width (second-to-last dim alignment)


def _round_up(x, m):
    return (x + m - 1) // m * m


def _mlp_kernel(x_ref, w1_ref, b1_ref, w2_ref, b2_ref, o_ref):
    # Hidden layer: bf16 MXU matmul, f32 accumulation.
    h = jnp.dot(x_ref[...], w1_ref[...], preferred_element_type=jnp.float32)
    h = h + b1_ref[...]                       # (1, Hp) f32 bias, broadcasts
    # sigmoid(h) = 1 / (1 + exp(-h)): exp on the EUP, approx reciprocal on the
    # EUP too -> keeps the VALU slots free of a full-precision divide.
    h = pl.reciprocal(1.0 + jnp.exp(-h), approx=True)
    # Output layer: cast to bf16 only for the MXU pass; accumulate in f32.
    y = jnp.dot(h.astype(w2_ref.dtype), w2_ref[...],
                preferred_element_type=jnp.float32)
    y = y + b2_ref[...]                       # (1, Op) f32 bias
    o_ref[...] = y.astype(o_ref.dtype)


@functools.partial(jax.jit, static_argnames=("block_b",))
def mlp_forward(x, w1, b1, w2, b2, *, block_b=512):
    """x: [B, F]; w1: [F, H]; b1: [H]; w2: [H, O]; b2: [O]  (all float32).

    Weights are already stored in [in, out] layout, i.e. transposed vs.
    torch.nn.Linear's [out, in], so the kernel computes x @ W + b which
    matches PyTorch's x @ W.T + b.
    Returns [B, O] float32.
    """
    B, F = x.shape
    H = w1.shape[1]
    O = w2.shape[1]

    # Pad to TPU-friendly shapes: lanes to 128, batch tile to a multiple of 8.
    Fp = _round_up(F, LANE)
    Hp = _round_up(H, LANE)
    Op = _round_up(O, LANE)
    tB = min(_round_up(B, SUBLANE), block_b)
    Bp = _round_up(B, tB)

    # Zero-pad and cast matmul operands to bf16; biases stay f32.
    xp = jnp.zeros((Bp, Fp), jnp.bfloat16).at[:B, :F].set(x.astype(jnp.bfloat16))
    w1p = jnp.zeros((Fp, Hp), jnp.bfloat16).at[:F, :H].set(w1.astype(jnp.bfloat16))
    w2p = jnp.zeros((Hp, Op), jnp.bfloat16).at[:H, :O].set(w2.astype(jnp.bfloat16))
    b1p = jnp.zeros((1, Hp), jnp.float32).at[0, :H].set(
        b1.astype(jnp.float32).reshape(-1))
    b2p = jnp.zeros((1, Op), jnp.float32).at[0, :O].set(
        b2.astype(jnp.float32).reshape(-1))

    out_padded = pl.pallas_call(
        _mlp_kernel,
        out_shape=jax.ShapeDtypeStruct((Bp, Op), jnp.float32),
        grid=(Bp // tB,),
        in_specs=[
            pl.BlockSpec((tB, Fp), lambda i: (i, 0)),   # x: streamed per tile
            pl.BlockSpec((Fp, Hp), lambda i: (0, 0)),   # w1: VMEM-resident
            pl.BlockSpec((1, Hp), lambda i: (0, 0)),    # b1
            pl.BlockSpec((Hp, Op), lambda i: (0, 0)),   # w2: VMEM-resident
            pl.BlockSpec((1, Op), lambda i: (0, 0)),    # b2
        ],
        out_specs=pl.BlockSpec((tB, Op), lambda i: (i, 0)),
        compiler_params=pltpu.CompilerParams(
            dimension_semantics=("parallel",),          # megacore-shardable
            vmem_limit_bytes=64 * 1024 * 1024,          # fits v7x's 64 MiB
        ),
    )(xp, w1p, b1p, w2p, b2p)

    # TODO(synk): for large F/H (weights > ~tens of MiB) add a K-tiling grid
    # axis over F/H with a VMEM f32 accumulator instead of full-resident weights.
    return out_padded[:B, :O]


def init_params(key, n_feature, n_hidden, n_output, dtype=jnp.float32):
    """torch.nn.Linear-style init: U(-1/sqrt(fan_in), +1/sqrt(fan_in)).
    Weights stored in [in, out] layout."""
    k1, k2, k3, k4 = jax.random.split(key, 4)
    bound1 = 1.0 / jnp.sqrt(n_feature)
    bound2 = 1.0 / jnp.sqrt(n_hidden)
    w1 = jax.random.uniform(k1, (n_feature, n_hidden), dtype, -bound1, bound1)
    b1 = jax.random.uniform(k2, (n_hidden,), dtype, -bound1, bound1)
    w2 = jax.random.uniform(k3, (n_hidden, n_output), dtype, -bound2, bound2)
    b2 = jax.random.uniform(k4, (n_output,), dtype, -bound2, bound2)
    return w1, b1, w2, b2


def reference_forward(x, w1, b1, w2, b2):
    h = jax.nn.sigmoid(x @ w1 + b1)
    return h @ w2 + b2


if __name__ == "__main__":
    key = jax.random.PRNGKey(0)
    kx, kp = jax.random.split(key)

    batch, n_feature, n_hidden, n_output = 8, 32, 64, 16
    x = jax.random.normal(kx, (batch, n_feature), jnp.float32)
    w1, b1, w2, b2 = init_params(kp, n_feature, n_hidden, n_output)

    out = mlp_forward(x, w1, b1, w2, b2)
    out = jax.block_until_ready(out)

    ref = reference_forward(x, w1, b1, w2, b2)
    assert out.shape == (batch, n_output)
    # Tolerance loosened vs. the f32 reference: bf16 matmuls + approx reciprocal.
    assert jnp.allclose(out, ref, atol=2e-2, rtol=2e-2), "mismatch vs reference"

    print("KERNEL_OK")
</pallas_src>

<mosaic_0001>
module attributes {stable_mosaic.version = 11 : i64} {
  func.func @_mlp_kernel(%arg0: i32, %arg1: memref<8x128xbf16, #tpu.memory_space<vmem>>, %arg2: memref<128x128xbf16, #tpu.memory_space<vmem>>, %arg3: memref<1x128xf32, #tpu.memory_space<vmem>>, %arg4: memref<128x128xbf16, #tpu.memory_space<vmem>>, %arg5: memref<1x128xf32, #tpu.memory_space<vmem>>, %arg6: memref<8x128xf32, #tpu.memory_space<vmem>>) attributes {dimension_semantics = [#tpu.dimension_semantics<parallel>], iteration_bounds = array<i64: 1>, scalar_prefetch = 0 : i64, scratch_operands = 0 : i64, tpu.core_type = #tpu.core_type<tc>, window_params = [{transform_indices = @transform_0, window_bounds = array<i64: 8, 128>}, {pipeline_mode = #tpu.pipeline_mode<synchronous>, transform_indices = @transform_1, window_bounds = array<i64: 128, 128>}, {pipeline_mode = #tpu.pipeline_mode<synchronous>, transform_indices = @transform_2, window_bounds = array<i64: 1, 128>}, {pipeline_mode = #tpu.pipeline_mode<synchronous>, transform_indices = @transform_3, window_bounds = array<i64: 128, 128>}, {pipeline_mode = #tpu.pipeline_mode<synchronous>, transform_indices = @transform_4, window_bounds = array<i64: 1, 128>}, {transform_indices = @transform_5, window_bounds = array<i64: 8, 128>}]} {
    %c0 = arith.constant 0 : index
    %c0_0 = arith.constant 0 : index
    %0 = vector.load %arg1[%c0, %c0_0] : memref<8x128xbf16, #tpu.memory_space<vmem>>, vector<8x128xbf16>
    %c0_1 = arith.constant 0 : index
    %c0_2 = arith.constant 0 : index
    %1 = vector.load %arg2[%c0_1, %c0_2] : memref<128x128xbf16, #tpu.memory_space<vmem>>, vector<128x128xbf16>
    %cst = arith.constant dense<0.000000e+00> : vector<8x128xf32>
    %2 = tpu.matmul %0, %1, %cst {dimension_numbers = #tpu.dot_dimension_numbers<[1], [0], [0], [1], [0, 0, 1, 1], [], []>} : vector<8x128xbf16>, vector<128x128xbf16>, vector<8x128xf32> -> vector<8x128xf32>
    %c0_3 = arith.constant 0 : index
    %c0_4 = arith.constant 0 : index
    %3 = vector.load %arg3[%c0_3, %c0_4] : memref<1x128xf32, #tpu.memory_space<vmem>>, vector<1x128xf32>
    %4 = vector.broadcast %3 : vector<1x128xf32> to vector<8x128xf32>
    %5 = arith.addf %2, %4 : vector<8x128xf32>
    %cst_5 = arith.constant 0.000000e+00 : f32
    %6 = vector.broadcast %cst_5 : f32 to vector<8x128xf32>
    %7 = arith.subf %6, %5 : vector<8x128xf32>
    %8 = math.exp %7 : vector<8x128xf32>
    %cst_6 = arith.constant 1.000000e+00 : f32
    %9 = vector.broadcast %cst_6 : f32 to vector<8x128xf32>
    %10 = arith.addf %9, %8 : vector<8x128xf32>
    %11 = tpu.reciprocal %10 {approx = true} : vector<8x128xf32> -> vector<8x128xf32>
    %12 = arith.truncf %11 : vector<8x128xf32> to vector<8x128xbf16>
    %c0_7 = arith.constant 0 : index
    %c0_8 = arith.constant 0 : index
    %13 = vector.load %arg4[%c0_7, %c0_8] : memref<128x128xbf16, #tpu.memory_space<vmem>>, vector<128x128xbf16>
    %cst_9 = arith.constant dense<0.000000e+00> : vector<8x128xf32>
    %14 = tpu.matmul %12, %13, %cst_9 {dimension_numbers = #tpu.dot_dimension_numbers<[1], [0], [0], [1], [0, 0, 1, 1], [], []>} : vector<8x128xbf16>, vector<128x128xbf16>, vector<8x128xf32> -> vector<8x128xf32>
    %c0_10 = arith.constant 0 : index
    %c0_11 = arith.constant 0 : index
    %15 = vector.load %arg5[%c0_10, %c0_11] : memref<1x128xf32, #tpu.memory_space<vmem>>, vector<1x128xf32>
    %16 = vector.broadcast %15 : vector<1x128xf32> to vector<8x128xf32>
    %17 = arith.addf %14, %16 : vector<8x128xf32>
    %c0_12 = arith.constant 0 : index
    %c0_13 = arith.constant 0 : index
    %18 = vector.load %arg6[%c0_12, %c0_13] : memref<8x128xf32, #tpu.memory_space<vmem>>, vector<8x128xf32>
    tpu.vector_store %arg6[%c0_12, %c0_13], %17 {strides = array<i32>} : memref<8x128xf32, #tpu.memory_space<vmem>>, vector<8x128xf32>,
    return
  }
  func.func @transform_0(%arg0: i32) -> (i32, i32) {
    %c0_i32 = arith.constant 0 : i32
    %c0_i32_0 = arith.constant 0 : i32
    return %arg0, %c0_i32 : i32, i32
  }
  func.func @transform_1(%arg0: i32) -> (i32, i32) {
    %c0_i32 = arith.constant 0 : i32
    %c0_i32_0 = arith.constant 0 : i32
    %c0_i32_1 = arith.constant 0 : i32
    return %c0_i32, %c0_i32_0 : i32, i32
  }
  func.func @transform_2(%arg0: i32) -> (i32, i32) {
    %c0_i32 = arith.constant 0 : i32
    %c0_i32_0 = arith.constant 0 : i32
    %c0_i32_1 = arith.constant 0 : i32
    return %c0_i32, %c0_i32_0 : i32, i32
  }
  func.func @transform_3(%arg0: i32) -> (i32, i32) {
    %c0_i32 = arith.constant 0 : i32
    %c0_i32_0 = arith.constant 0 : i32
    %c0_i32_1 = arith.constant 0 : i32
    return %c0_i32, %c0_i32_0 : i32, i32
  }
  func.func @transform_4(%arg0: i32) -> (i32, i32) {
    %c0_i32 = arith.constant 0 : i32
    %c0_i32_0 = arith.constant 0 : i32
    %c0_i32_1 = arith.constant 0 : i32
    return %c0_i32, %c0_i32_0 : i32, i32
  }
  func.func @transform_5(%arg0: i32) -> (i32, i32) {
    %c0_i32 = arith.constant 0 : i32
    %c0_i32_0 = arith.constant 0 : i32
    return %arg0, %c0_i32 : i32, i32
  }
}

</mosaic_0001>

<bundles_post_ra>
// kernel: mlp_forward.1
= control target key start
LH: loop header
LB: loop body
LE: loop exit
PB: predicated region body
PF: predicated region fallthrough
CT: control target
= control target key end

     0   :  { %10 = vsyncpa [#allocation3], 0  ;;  %s689_s0 = inlined_call_operand.hbm [shape: bf16[8,128], index: 0, kind: input, shape index: {}]   ;;  %s690_s1 = inlined_call_operand.hbm [shape: bf16[128,128], index: 1, kind: input, shape index: {}]   ;;  %s691_s2 = inlined_call_operand.hbm [shape: f32[1,128], index: 2, kind: input, shape index: {}]   ;;  %s692_s3 = inlined_call_operand.hbm [shape: bf16[128,128], index: 3, kind: input, shape index: {}]   ;;  %s693_s4 = inlined_call_operand.hbm [shape: f32[1,128], index: 4, kind: input, shape index: {}]   ;;  %s694_s5 = inlined_call_operand.hbm [shape: f32[8,128], index: 5, kind: output, shape index: {}]  }
   0x1   :  { %11 = vsyncpa [#allocation6], 0 }
   0x2   :  { %12 = vsyncpa [#allocation9], 0 }
   0x3   :  { %13 = vsyncpa [#allocation4], 0  ;;  %s577_s18 = smov [#allocation5]   ;;  %s437_s22 = scalar_lea.hbm %s690_s1, 1024 }
   0x4   :  { %s29_s19 = sshll.u32 %s577_s18, 4  ;;  %p438_p0 = scmp.ne.s32.totalorder %s690_s1, %s437_s22  ;;  %s30_s19 = int_to_ptr.vmem [resolvable:$true] %s29_s19 }
   0x5   :  { %p441_p1 = scmp.lt.u32.totalorder %s437_s22, %s690_s1 }
   0x7   :  { %p443_p2 = pnand %p441_p1, %p438_p0 }
   0x9   :  { %446 = shalt.err (!%p443_p2)
}
   0xa   :  { %s447_s27 = scalar_lea.vmem %s30_s19, 1024  ;;  %p452_p4 = scmp.lt.s32.totalorder %s30_s19, %s30_s19 }
   0xb   :  { %p448_p3 = scmp.ne.s32.totalorder %s30_s19, %s447_s27  ;;  %p453_p5 = scmp.lt.s32.totalorder %s447_s27, %s447_s27 }
   0xd   :  { %p454_p6 = por %p453_p5, %p452_p4 }
   0xf   :  { %p455_p7 = pnand %p454_p6, %p448_p3 }
  0x11   :  { %458 = shalt.err (!%p455_p7)
}
  0x12   :  { %s578_s28 = smov 64   ;;  %s579_s29 = smov 4  }
  0x13   :  { %35 = dma.hbm_to_vmem [thread:$0]  %s690_s1, 1024, %s30_s19, [#allocation6], %s578_s28, %s578_s28, %s579_s29  }
  0x14   :  { %s580_s7 = smov [#allocation8]   ;;  %s581_s9 = smov [#allocation2]  }
  0x15   :  { %s51_s8 = sshll.u32 %s580_s7, 4  ;;  %s20_s10 = sshll.u32 %s581_s9, 4  ;;  %s52_s8 = int_to_ptr.vmem [resolvable:$true] %s51_s8  ;;  %s21_s10 = int_to_ptr.vmem [resolvable:$true] %s20_s10 }
  0x16   :  { %s459_s13 = scalar_lea.hbm %s692_s3, 1024 }
  0x17   :  { %p460_p8 = scmp.ne.s32.totalorder %s692_s3, %s459_s13  ;;  %p463_p9 = scmp.lt.u32.totalorder %s459_s13, %s692_s3 }
  0x19   :  { %p465_p10 = pnand %p463_p9, %p460_p8 }
  0x1b   :  { %468 = shalt.err (!%p465_p10)
}
  0x1c   :  { %s469_s1 = scalar_lea.vmem %s52_s8, 1024  ;;  %p474_p12 = scmp.lt.s32.totalorder %s52_s8, %s52_s8 }
  0x1d   :  { %p470_p11 = scmp.ne.s32.totalorder %s52_s8, %s469_s1  ;;  %p475_p13 = scmp.lt.s32.totalorder %s469_s1, %s469_s1 }
  0x1f   :  { %p476_p0 = por %p475_p13, %p474_p12 }
  0x21   :  { %p477_p1 = pnand %p476_p0, %p470_p11 }
  0x23   :  { %480 = shalt.err (!%p477_p1)
}
  0x24   :  { %57 = dma.hbm_to_vmem [thread:$0]  %s692_s3, 1024, %s52_s8, [#allocation9], %s578_s28, %s578_s28, %s579_s29  }
  0x25   :  { %s481_s22 = scalar_lea.hbm %s689_s0, 64 }
  0x26   :  { %p482_p2 = scmp.ne.s32.totalorder %s689_s0, %s481_s22  ;;  %p485_p3 = scmp.lt.u32.totalorder %s481_s22, %s689_s0 }
  0x28   :  { %p487_p4 = pnand %p485_p3, %p482_p2 }
  0x2a   :  { %490 = shalt.err (!%p487_p4)
}
  0x2b   :  { %s491_s27 = scalar_lea.vmem %s21_s10, 64  ;;  %p496_p6 = scmp.lt.s32.totalorder %s21_s10, %s21_s10 }
  0x2c   :  { %p492_p5 = scmp.ne.s32.totalorder %s21_s10, %s491_s27  ;;  %p497_p7 = scmp.lt.s32.totalorder %s491_s27, %s491_s27 }
  0x2e   :  { %p498_p8 = por %p497_p7, %p496_p6 }
  0x30   :  { %p499_p9 = pnand %p498_p8, %p492_p5 }
  0x32   :  { %502 = shalt.err (!%p499_p9)
}
  0x33   :  { %23 = dma.hbm_to_vmem [thread:$0]  %s689_s0, 64, %s21_s10, [#allocation3]  }
  0x34   :  { %s582_s29 = smov [#allocation7]   ;;  %s583_s6 = smov [#allocation10]  }
  0x35   :  { %s42_s30 = sshll.u32 %s582_s29, 4  ;;  %s64_s7 = sshll.u32 %s583_s6, 4  ;;  %s43_s30 = int_to_ptr.vmem [resolvable:$true] %s42_s30  ;;  %s65_s7 = int_to_ptr.vmem [resolvable:$true] %s64_s7 }
  0x36   :  { %s503_s11 = scalar_lea.hbm %s691_s2, 16 }
  0x37   :  { %p504_p10 = scmp.ne.s32.totalorder %s691_s2, %s503_s11  ;;  %p507_p11 = scmp.lt.u32.totalorder %s503_s11, %s691_s2 }
  0x39   :  { %p509_p12 = pnand %p507_p11, %p504_p10 }
  0x3b   :  { %512 = shalt.err (!%p509_p12)
}
  0x3c   :  { %s513_s0 = scalar_lea.vmem %s43_s30, 16  ;;  %s517_s10 = scalar_lea.vmem %s43_s30, 32 }
  0x3d   :  { %p514_p13 = scmp.ne.s32.totalorder %s43_s30, %s513_s0  ;;  %p518_p0 = scmp.lt.s32.totalorder %s43_s30, %s43_s30 }
  0x3e   :  { %p519_p1 = scmp.lt.s32.totalorder %s517_s10, %s513_s0 }
  0x40   :  { %p520_p2 = por %p519_p1, %p518_p0 }
  0x42   :  { %p521_p3 = pnand %p520_p2, %p514_p13 }
  0x44   :  { %524 = shalt.err (!%p521_p3)
}
  0x45   :  { %45 = dma.hbm_to_vmem [thread:$0]  %s691_s2, 16, %s43_s30, [#allocation6]  }
  0x46   :  { %s525_s19 = scalar_lea.hbm %s693_s4, 16 }
  0x47   :  { %p526_p4 = scmp.ne.s32.totalorder %s693_s4, %s525_s19  ;;  %p529_p5 = scmp.lt.u32.totalorder %s525_s19, %s693_s4 }
  0x49   :  { %p531_p6 = pnand %p529_p5, %p526_p4 }
  0x4b   :  { %534 = shalt.err (!%p531_p6)
}
  0x4c   :  { %s535_s24 = scalar_lea.vmem %s65_s7, 16  ;;  %s539_s25 = scalar_lea.vmem %s65_s7, 32 }
  0x4d   :  { %p536_p7 = scmp.ne.s32.totalorder %s65_s7, %s535_s24  ;;  %p540_p8 = scmp.lt.s32.totalorder %s65_s7, %s65_s7 }
  0x4e   :  { %p541_p9 = scmp.lt.s32.totalorder %s539_s25, %s535_s24 }
  0x50   :  { %p542_p10 = por %p541_p9, %p540_p8 }
  0x52   :  { %p543_p11 = pnand %p542_p10, %p536_p7 }
  0x54   :  { %546 = shalt.err (!%p543_p11)
}
  0x55   :  { %67 = dma.hbm_to_vmem [thread:$0]  %s693_s4, 16, %s65_s7, [#allocation9]  }
  0x56   :  { %569 = dma.done.wait [#allocation3], 64  }
  0x57   :  { %570 = vsyncadd [#allocation3], 4294967232 }
  0x58   :  { %571 = dma.done.wait [#allocation6], 1040  }
  0x59   :  { %572 = vsyncadd [#allocation6], 4294966256 }
  0x5a   :  { %573 = dma.done.wait [#allocation9], 1040  }
  0x5b   :  { %574 = vsyncadd [#allocation9], 4294966256  ;;  %v584_v0 = vmov 0.0   ;;  %vm585_vm0 = vmmov 0   ;;  %v417_v1 = vld [vmem:[#allocation5] sm:$0xff]   ;;  %v418_v2 = vld [vmem:[#allocation5 + $0x8] sm:$0xff]  }
  0x5c   :  { %367 = vmatprep.subr.bf16.mxu0 %v584_v0  ;;  %383 = vmatprep.mubr.msk.bf16.mxu0 %vm585_vm0, %v584_v0  ;;  %v419_v3 = vld [vmem:[#allocation5 + $0x10] sm:$0xff]   ;;  %v420_v4 = vld [vmem:[#allocation5 + $0x18] sm:$0xff]   ;;  %v421_v5 = vld [vmem:[#allocation5 + $0x20] sm:$0xff]   ;;  %s586_s4 = smov [#allocation11]  }
  0x5d   :  { %387 = vmatprep.subr.bf16.mxu1 %v584_v0  ;;  %403 = vmatprep.mubr.msk.bf16.mxu1 %vm585_vm0, %v584_v0  ;;  %v422_v6 = vld [vmem:[#allocation5 + $0x28] sm:$0xff]   ;;  %v423_v7 = vld [vmem:[#allocation5 + $0x30] sm:$0xff]   ;;  %v424_v8 = vld [vmem:[#allocation5 + $0x38] sm:$0xff]   ;;  %s320_s27 = sshll.u32 %s586_s4, 4  ;;  %s321_s27 = int_to_ptr.vmem [resolvable:$true] %s320_s27 }
  0x5e   :  { %368 = vmatpush3.bf16.msra.mxu0 %v417_v1  ;;  %v84_v9 = vld [vmem:[#allocation2] sm:$0xf]  ;;  %v425_v10 = vld [vmem:[#allocation8] sm:$0xff]   ;;  %v426_v11 = vld [vmem:[#allocation8 + $0x8] sm:$0xff]   ;;  %s547_s3 = scalar_lea.vmem %s321_s27, 128  ;;  %p552_p13 = scmp.lt.s32.totalorder %s321_s27, %s321_s27 }
  0x5f   :  { %369 = vmatprep.subr.bf16.mxu0 %v584_v0  ;;  %388 = vmatpush3.bf16.msra.mxu1 %v425_v10  ;;  %v427_v12 = vld [vmem:[#allocation8 + $0x10] sm:$0xff]   ;;  %v428_v13 = vld [vmem:[#allocation8 + $0x18] sm:$0xff]   ;;  %v429_v14 = vld [vmem:[#allocation8 + $0x20] sm:$0xff]   ;;  %p548_p12 = scmp.ne.s32.totalorder %s321_s27, %s547_s3  ;;  %p553_p0 = scmp.lt.s32.totalorder %s547_s3, %s547_s3 }
  0x60   :  { %389 = vmatprep.subr.bf16.mxu1 %v584_v0  ;;  %v430_v15 = vld [vmem:[#allocation8 + $0x28] sm:$0xff]   ;;  %v431_v16 = vld [vmem:[#allocation8 + $0x30] sm:$0xff]   ;;  %v432_v17 = vld [vmem:[#allocation8 + $0x38] sm:$0xff]  }
  0x61   :  { %v331_v18 = vld [vmem:[#allocation7] ss:$0 sm:$0xff]  ;;  %v340_v30 = vld [vmem:[#allocation10] ss:$0 sm:$0xff]  ;;  %p554_p1 = por %p553_p0, %p552_p13 }
  0x62   :  { %370 = vmatpush3.bf16.msra.mxu0 %v418_v2 }
  0x63   :  { %371 = vmatprep.subr.bf16.mxu0 %v584_v0  ;;  %390 = vmatpush3.bf16.msra.mxu1 %v426_v11  ;;  %p555_p2 = pnand %p554_p1, %p548_p12 }
  0x64   :  { %391 = vmatprep.subr.bf16.mxu1 %v584_v0 }
  0x66   :  { %372 = vmatpush3.bf16.msra.mxu0 %v419_v3 }
  0x67   :  { %373 = vmatprep.subr.bf16.mxu0 %v584_v0  ;;  %392 = vmatpush3.bf16.msra.mxu1 %v427_v12 }
  0x68   :  { %393 = vmatprep.subr.bf16.mxu1 %v584_v0 }
  0x6a   :  { %374 = vmatpush3.bf16.msra.mxu0 %v420_v4 }
  0x6b   :  { %375 = vmatprep.subr.bf16.mxu0 %v584_v0  ;;  %394 = vmatpush3.bf16.msra.mxu1 %v428_v13 }
  0x6c   :  { %395 = vmatprep.subr.bf16.mxu1 %v584_v0 }
  0x6e   :  { %376 = vmatpush3.bf16.msra.mxu0 %v421_v5 }
  0x6f   :  { %377 = vmatprep.subr.bf16.mxu0 %v584_v0  ;;  %396 = vmatpush3.bf16.msra.mxu1 %v429_v14 }
  0x70   :  { %397 = vmatprep.subr.bf16.mxu1 %v584_v0 }
  0x72   :  { %378 = vmatpush3.bf16.msra.mxu0 %v422_v6 }
  0x73   :  { %379 = vmatprep.subr.bf16.mxu0 %v584_v0  ;;  %398 = vmatpush3.bf16.msra.mxu1 %v430_v15 }
  0x74   :  { %399 = vmatprep.subr.bf16.mxu1 %v584_v0 }
  0x76   :  { %380 = vmatpush3.bf16.msra.mxu0 %v423_v7 }
  0x77   :  { %381 = vmatprep.subr.bf16.mxu0 %v584_v0  ;;  %400 = vmatpush3.bf16.msra.mxu1 %v431_v16 }
  0x78   :  { %401 = vmatprep.subr.bf16.mxu1 %v584_v0 }
  0x7a   :  { %382 = vmatpush3.bf16.msra.mxu0 %v424_v8 }
  0x7b   :  { %402 = vmatpush3.bf16.msra.mxu1 %v432_v17 }
  0x7d   :  { %384 = vmatmul.mubr.bf16.vlgmr.msra.gmra.mrb[0].mxu0 %v84_v9 }
 0x150   :  { %v190_v19 = vpop.f32.mrb[0].mxu0 }
 0x151   :  { %v191_v20 = vadd.f32 %v331_v18, %v190_v19  ;;  %v385_v21 = vpop.f32.mrb[1].mxu0 }
 0x152   :  { %v193_v22 = vpop.f32.mrb[2].mxu0 }
 0x153   :  { %v196_v23 = vsub.f32 0.0, %v191_v20  ;;  %v386_v24 = vpop.f32.mrb[3].mxu0 }
 0x155   :  { %v197_v25 = vmul.f32 1.442695, %v196_v23 }
 0x157   :  { %433 = vpow2.f32 %v197_v25 }
 0x161   :  { %v434_v26 = vpop.eup %433 }
 0x162   :  { %v199_v27 = vadd.f32 1.0, %v434_v26 }
 0x164   :  { %435 = vrcp.f32 %v199_v27 }
 0x16e   :  { %v436_v28 = vpop.eup %435 }
 0x16f   :  { %v201_v29 = vpack.c.bf16 %v436_v28, %v436_v28 }
 0x171   :  { %404 = vmatmul.mubr.bf16.vlgmr.msra.gmra.mrb[0].mxu1 %v201_v29 }
 0x244   :  { %v307_v31 = vpop.f32.mrb[0].mxu1 }
 0x245   :  { %v308_v32 = vadd.f32 %v340_v30, %v307_v31  ;;  %v405_v33 = vpop.f32.mrb[1].mxu1 }
 0x246   :  { %v310_v34 = vpop.f32.mrb[2].mxu1 }
 0x247   :  { %313 = vst [vmem:[#allocation11] sm:$0xff] %v308_v32  ;;  %v406_v35 = vpop.f32.mrb[3].mxu1 }
 0x248   :  { %558 = shalt.err (!%p555_p2)
}
 0x249   :  { %s559_s30 = scalar_lea.hbm %s694_s5, 128 }
 0x24a   :  { %p560_p3 = scmp.ne.s32.totalorder %s694_s5, %s559_s30  ;;  %p563_p4 = scmp.lt.u32.totalorder %s559_s30, %s694_s5 }
 0x24c   :  { %p565_p5 = pnand %p563_p4, %p560_p3 }
 0x24e   :  { %568 = shalt.err (!%p565_p5)
}
 0x24f   :  { %323 = dma.vmem_to_hbm [thread:$0]  %s321_s27, 128, %s694_s5, [#allocation4]  }
 0x250   :  { %575 = dma.done.wait [#allocation4], 128  }
 0x251   :  { %576 = vsyncadd [#allocation4], 4294967168 }
 0x252   :  { %327 = vsyncpa [#allocation3], 1 }
 0x253   :  { %328 = vsyncpa [#allocation6], 1 }
 0x254   :  { %329 = vsyncpa [#allocation9], 1 }
 0x255   :  { %330 = vsyncpa [#allocation4], 1 }

</bundles_post_ra>
